<compile_context>
chip_gen: v7x
topology: tpu7x:2x2x1
jax: 0.10.0
libtpu: 0.0.40
codegen_flags: <defaults>
</compile_context>

<pallas_src>
import jax
import jax.numpy as jnp
from jax.experimental import pallas as pl
from jax.experimental.pallas import tpu as pltpu

HID = 64  # hidden width of fc1/fc2, fixed by the PyTorch module


def rnd_kernel(x_ref, w1_ref, b1_ref, w2_ref, b2_ref, w3_ref, b3_ref, out_ref):
    """Fused 3-layer MLP on one batch tile (bf16 matmuls, f32 accumulation)."""
    x = x_ref[...].astype(jnp.bfloat16)                               # (TB, S)
    h1 = jnp.dot(x, w1_ref[...], preferred_element_type=jnp.float32) + b1_ref[...]
    h1 = jnp.maximum(h1, 0.0).astype(jnp.bfloat16)                    # (TB, 64)
    h2 = jnp.dot(h1, w2_ref[...], preferred_element_type=jnp.float32) + b2_ref[...]
    h2 = jnp.maximum(h2, 0.0).astype(jnp.bfloat16)                    # (TB, 64)
    out = jnp.dot(h2, w3_ref[...], preferred_element_type=jnp.float32) + b3_ref[...]
    out_ref[...] = out.astype(out_ref.dtype)                          # (TB, A*F) f32


def _round_up(v, m):
    return -(-v // m) * m


def rnd_forward(state, params, action_dim, feature_dim, block_batch=2048):
    """RND forward. state: [batch, state_dim] f32 -> [batch, action_dim, feature_dim] f32."""
    w1, b1, w2, b2, w3, b3 = params
    batch, state_dim = state.shape
    out_dim = action_dim * feature_dim

    # Tile: multiple of 16 (bf16 sublane packing), capped at block_batch (VMEM-
    # portable incl. v5e's 16 MiB scoped default), and clamped to ~batch/4 so
    # large batches always yield >=4 grid steps (v7x megacore + DMA pipeline).
    tb = max(16, min(_round_up(block_batch, 16), _round_up(pl.cdiv(batch, 4), 16)))
    grid = (pl.cdiv(batch, tb),)  # ragged last block masked by Pallas

    # Weights are tiny (~15 KB) and DMA'd once; cast to MXU-native bf16 here.
    w1b, w2b, w3b = (w.astype(jnp.bfloat16) for w in (w1, w2, w3))

    const = lambda i: (0, 0)  # weights/biases: same block every step -> VMEM-resident
    weight_elems = state_dim * HID + HID * HID + HID * out_dim
    flops = 2 * batch * weight_elems
    bytes_accessed = (batch * state_dim * 4       # f32 activations in
                      + batch * out_dim * 4       # f32 out
                      + weight_elems * 2          # bf16 weights (loaded once)
                      + (HID + HID + out_dim) * 4)  # f32 biases

    flat = pl.pallas_call(
        rnd_kernel,
        out_shape=jax.ShapeDtypeStruct((batch, out_dim), jnp.float32),
        grid_spec=pltpu.PrefetchScalarGridSpec(
            num_scalar_prefetch=0,
            grid=grid,
            in_specs=[
                pl.BlockSpec((tb, state_dim), lambda i: (i, 0)),
                pl.BlockSpec((state_dim, HID), const),
                pl.BlockSpec((1, HID), const),
                pl.BlockSpec((HID, HID), const),
                pl.BlockSpec((1, HID), const),
                pl.BlockSpec((HID, out_dim), const),
                pl.BlockSpec((1, out_dim), const),
            ],
            out_specs=pl.BlockSpec((tb, out_dim), lambda i: (i, 0)),
        ),
        compiler_params=pltpu.CompilerParams(
            dimension_semantics=("parallel",),  # megacore sharding on v7x
        ),
        cost_estimate=pl.CostEstimate(
            flops=flops, transcendentals=0, bytes_accessed=bytes_accessed),
    )(state, w1b, b1, w2b, b2, w3b, b3)

    # Equivalent of x.view(-1, action_dim, feature_dim) — pure metadata.
    return flat.reshape(batch, action_dim, feature_dim)


def init_params(key, state_dim, action_dim, feature_dim):
    """Deterministic synthetic parameters (same shapes as the PyTorch module)."""
    out_dim = action_dim * feature_dim
    k1, k2, k3, k4, k5, k6 = jax.random.split(key, 6)
    w1 = jax.random.normal(k1, (state_dim, HID), jnp.float32) * 0.1
    b1 = jax.random.normal(k2, (1, HID), jnp.float32) * 0.01
    w2 = jax.random.normal(k3, (HID, HID), jnp.float32) * 0.1
    b2 = jax.random.normal(k4, (1, HID), jnp.float32) * 0.01
    w3 = jax.random.normal(k5, (HID, out_dim), jnp.float32) * 0.1
    b3 = jax.random.normal(k6, (1, out_dim), jnp.float32) * 0.01
    return (w1, b1, w2, b2, w3, b3)


def reference_forward(state, params, action_dim, feature_dim):
    """Pure-JAX reference with the same bf16/f32 mixed precision as the kernel."""
    w1, b1, w2, b2, w3, b3 = params
    x = state.astype(jnp.bfloat16)
    h1 = jnp.maximum(
        jnp.dot(x, w1.astype(jnp.bfloat16), preferred_element_type=jnp.float32) + b1,
        0.0).astype(jnp.bfloat16)
    h2 = jnp.maximum(
        jnp.dot(h1, w2.astype(jnp.bfloat16), preferred_element_type=jnp.float32) + b2,
        0.0).astype(jnp.bfloat16)
    out = jnp.dot(h2, w3.astype(jnp.bfloat16), preferred_element_type=jnp.float32) + b3
    return out.reshape(-1, action_dim, feature_dim)


if __name__ == "__main__":
    state_dim, action_dim, feature_dim = 16, 4, 8

    key = jax.random.PRNGKey(0)
    k_state, k_params = jax.random.split(key)
    params = init_params(k_params, state_dim, action_dim, feature_dim)

    # Non-tile-multiple batch with a multi-step grid (exercises the >=4-step
    # tiling, 'parallel' semantics, and the ragged last-block masking).
    batch = 400
    state = jax.random.normal(k_state, (batch, state_dim), jnp.float32)
    out = jax.block_until_ready(rnd_forward(state, params, action_dim, feature_dim))
    ref = reference_forward(state, params, action_dim, feature_dim)
    assert out.shape == (batch, action_dim, feature_dim), out.shape
    assert jnp.allclose(out, ref, atol=1e-3, rtol=1e-3), \
        float(jnp.max(jnp.abs(out - ref)))

    # Tiny batch (single ragged grid step).
    small = jax.random.normal(jax.random.PRNGKey(1), (8, state_dim), jnp.float32)
    out_s = jax.block_until_ready(rnd_forward(small, params, action_dim, feature_dim))
    ref_s = reference_forward(small, params, action_dim, feature_dim)
    assert out_s.shape == (8, action_dim, feature_dim), out_s.shape
    assert jnp.allclose(out_s, ref_s, atol=1e-3, rtol=1e-3), \
        float(jnp.max(jnp.abs(out_s - ref_s)))

    print("KERNEL_OK")
</pallas_src>

<mosaic_0001>
module attributes {stable_mosaic.version = 11 : i64} {
  func.func @rnd_kernel(%arg0: i32, %arg1: memref<112x16xf32, #tpu.memory_space<vmem>>, %arg2: memref<16x64xbf16, #tpu.memory_space<vmem>>, %arg3: memref<1x64xf32, #tpu.memory_space<vmem>>, %arg4: memref<64x64xbf16, #tpu.memory_space<vmem>>, %arg5: memref<1x64xf32, #tpu.memory_space<vmem>>, %arg6: memref<64x32xbf16, #tpu.memory_space<vmem>>, %arg7: memref<1x32xf32, #tpu.memory_space<vmem>>, %arg8: memref<112x32xf32, #tpu.memory_space<vmem>>) attributes {dimension_semantics = [#tpu.dimension_semantics<parallel>], iteration_bounds = array<i64: 4>, scalar_prefetch = 0 : i64, scratch_operands = 0 : i64, tpu.core_type = #tpu.core_type<tc>, window_params = [{transform_indices = @transform_0, window_bounds = array<i64: 112, 16>}, {pipeline_mode = #tpu.pipeline_mode<synchronous>, transform_indices = @transform_1, window_bounds = array<i64: 16, 64>}, {pipeline_mode = #tpu.pipeline_mode<synchronous>, transform_indices = @transform_2, window_bounds = array<i64: 1, 64>}, {pipeline_mode = #tpu.pipeline_mode<synchronous>, transform_indices = @transform_3, window_bounds = array<i64: 64, 64>}, {pipeline_mode = #tpu.pipeline_mode<synchronous>, transform_indices = @transform_4, window_bounds = array<i64: 1, 64>}, {pipeline_mode = #tpu.pipeline_mode<synchronous>, transform_indices = @transform_5, window_bounds = array<i64: 64, 32>}, {pipeline_mode = #tpu.pipeline_mode<synchronous>, transform_indices = @transform_6, window_bounds = array<i64: 1, 32>}, {transform_indices = @transform_7, window_bounds = array<i64: 112, 32>}]} {
    %c0 = arith.constant 0 : index
    %c0_0 = arith.constant 0 : index
    %0 = vector.load %arg1[%c0, %c0_0] : memref<112x16xf32, #tpu.memory_space<vmem>>, vector<112x16xf32>
    %1 = arith.truncf %0 : vector<112x16xf32> to vector<112x16xbf16>
    %c0_1 = arith.constant 0 : index
    %c0_2 = arith.constant 0 : index
    %2 = vector.load %arg2[%c0_1, %c0_2] : memref<16x64xbf16, #tpu.memory_space<vmem>>, vector<16x64xbf16>
    %cst = arith.constant dense<0.000000e+00> : vector<112x64xf32>
    %3 = tpu.matmul %1, %2, %cst {dimension_numbers = #tpu.dot_dimension_numbers<[1], [0], [0], [1], [0, 0, 1, 1], [], []>} : vector<112x16xbf16>, vector<16x64xbf16>, vector<112x64xf32> -> vector<112x64xf32>
    %c0_3 = arith.constant 0 : index
    %c0_4 = arith.constant 0 : index
    %4 = vector.load %arg3[%c0_3, %c0_4] : memref<1x64xf32, #tpu.memory_space<vmem>>, vector<1x64xf32>
    %5 = vector.broadcast %4 : vector<1x64xf32> to vector<112x64xf32>
    %6 = arith.addf %3, %5 : vector<112x64xf32>
    %cst_5 = arith.constant 0.000000e+00 : f32
    %7 = vector.broadcast %cst_5 : f32 to vector<112x64xf32>
    %8 = arith.maximumf %6, %7 : vector<112x64xf32>
    %9 = arith.truncf %8 : vector<112x64xf32> to vector<112x64xbf16>
    %c0_6 = arith.constant 0 : index
    %c0_7 = arith.constant 0 : index
    %10 = vector.load %arg4[%c0_6, %c0_7] : memref<64x64xbf16, #tpu.memory_space<vmem>>, vector<64x64xbf16>
    %cst_8 = arith.constant dense<0.000000e+00> : vector<112x64xf32>
    %11 = tpu.matmul %9, %10, %cst_8 {dimension_numbers = #tpu.dot_dimension_numbers<[1], [0], [0], [1], [0, 0, 1, 1], [], []>} : vector<112x64xbf16>, vector<64x64xbf16>, vector<112x64xf32> -> vector<112x64xf32>
    %c0_9 = arith.constant 0 : index
    %c0_10 = arith.constant 0 : index
    %12 = vector.load %arg5[%c0_9, %c0_10] : memref<1x64xf32, #tpu.memory_space<vmem>>, vector<1x64xf32>
    %13 = vector.broadcast %12 : vector<1x64xf32> to vector<112x64xf32>
    %14 = arith.addf %11, %13 : vector<112x64xf32>
    %cst_11 = arith.constant 0.000000e+00 : f32
    %15 = vector.broadcast %cst_11 : f32 to vector<112x64xf32>
    %16 = arith.maximumf %14, %15 : vector<112x64xf32>
    %17 = arith.truncf %16 : vector<112x64xf32> to vector<112x64xbf16>
    %c0_12 = arith.constant 0 : index
    %c0_13 = arith.constant 0 : index
    %18 = vector.load %arg6[%c0_12, %c0_13] : memref<64x32xbf16, #tpu.memory_space<vmem>>, vector<64x32xbf16>
    %cst_14 = arith.constant dense<0.000000e+00> : vector<112x32xf32>
    %19 = tpu.matmul %17, %18, %cst_14 {dimension_numbers = #tpu.dot_dimension_numbers<[1], [0], [0], [1], [0, 0, 1, 1], [], []>} : vector<112x64xbf16>, vector<64x32xbf16>, vector<112x32xf32> -> vector<112x32xf32>
    %c0_15 = arith.constant 0 : index
    %c0_16 = arith.constant 0 : index
    %20 = vector.load %arg7[%c0_15, %c0_16] : memref<1x32xf32, #tpu.memory_space<vmem>>, vector<1x32xf32>
    %21 = vector.broadcast %20 : vector<1x32xf32> to vector<112x32xf32>
    %22 = arith.addf %19, %21 : vector<112x32xf32>
    %c0_17 = arith.constant 0 : index
    %c0_18 = arith.constant 0 : index
    %23 = vector.load %arg8[%c0_17, %c0_18] : memref<112x32xf32, #tpu.memory_space<vmem>>, vector<112x32xf32>
    tpu.vector_store %arg8[%c0_17, %c0_18], %22 {strides = array<i32>} : memref<112x32xf32, #tpu.memory_space<vmem>>, vector<112x32xf32>,
    return
  }
  func.func @transform_0(%arg0: i32) -> (i32, i32) {
    %c0_i32 = arith.constant 0 : i32
    %c0_i32_0 = arith.constant 0 : i32
    return %arg0, %c0_i32 : i32, i32
  }
  func.func @transform_1(%arg0: i32) -> (i32, i32) {
    %c0_i32 = arith.constant 0 : i32
    %c0_i32_0 = arith.constant 0 : i32
    %c0_i32_1 = arith.constant 0 : i32
    return %c0_i32, %c0_i32_0 : i32, i32
  }
  func.func @transform_2(%arg0: i32) -> (i32, i32) {
    %c0_i32 = arith.constant 0 : i32
    %c0_i32_0 = arith.constant 0 : i32
    %c0_i32_1 = arith.constant 0 : i32
    return %c0_i32, %c0_i32_0 : i32, i32
  }
  func.func @transform_3(%arg0: i32) -> (i32, i32) {
    %c0_i32 = arith.constant 0 : i32
    %c0_i32_0 = arith.constant 0 : i32
    %c0_i32_1 = arith.constant 0 : i32
    return %c0_i32, %c0_i32_0 : i32, i32
  }
  func.func @transform_4(%arg0: i32) -> (i32, i32) {
    %c0_i32 = arith.constant 0 : i32
    %c0_i32_0 = arith.constant 0 : i32
    %c0_i32_1 = arith.constant 0 : i32
    return %c0_i32, %c0_i32_0 : i32, i32
  }
  func.func @transform_5(%arg0: i32) -> (i32, i32) {
    %c0_i32 = arith.constant 0 : i32
    %c0_i32_0 = arith.constant 0 : i32
    %c0_i32_1 = arith.constant 0 : i32
    return %c0_i32, %c0_i32_0 : i32, i32
  }
  func.func @transform_6(%arg0: i32) -> (i32, i32) {
    %c0_i32 = arith.constant 0 : i32
    %c0_i32_0 = arith.constant 0 : i32
    %c0_i32_1 = arith.constant 0 : i32
    return %c0_i32, %c0_i32_0 : i32, i32
  }
  func.func @transform_7(%arg0: i32) -> (i32, i32) {
    %c0_i32 = arith.constant 0 : i32
    %c0_i32_0 = arith.constant 0 : i32
    return %arg0, %c0_i32 : i32, i32
  }
}

</mosaic_0001>

<bundles_post_ra>
// kernel: tpu_custom_call.1
= control target key start
LH: loop header
LB: loop body
LE: loop exit
PB: predicated region body
PF: predicated region fallthrough
CT: control target
= control target key end

     0   :  { %s1493_s24 = smov 0   ;;  %s1495_s25 = smov 0   ;;  %s1809_s0 = inlined_call_operand.vmem [shape: f32[400,16], index: 0, kind: input, shape index: {}]   ;;  %s1810_s1 = inlined_call_operand.vmem [shape: bf16[16,64], index: 1, kind: input, shape index: {}]   ;;  %s1811_s2 = inlined_call_operand.vmem [shape: f32[1,64], index: 2, kind: input, shape index: {}]   ;;  %s1812_s3 = inlined_call_operand.vmem [shape: bf16[64,64], index: 3, kind: input, shape index: {}]   ;;  %s1813_s4 = inlined_call_operand.vmem [shape: f32[1,64], index: 4, kind: input, shape index: {}]   ;;  %s1814_s5 = inlined_call_operand.vmem [shape: bf16[64,32], index: 5, kind: input, shape index: {}]   ;;  %s1815_s6 = inlined_call_operand.vmem [shape: f32[1,32], index: 6, kind: input, shape index: {}]   ;;  %s1816_s7 = inlined_call_operand.vmem [shape: f32[400,32], index: 7, kind: output, shape index: {}]  }
   0x1   :  { %s1497_s26 = smov 0  }
   0x2 LB: > { %s1506_s27 = sadd.s32 4294967295, %s1417_s26   ;;  %s1508_s28 = sadd.s32 1, %s1417_s26   ;;  %s1417_s26 = sphi %s1497_s26, %s1823_s26   ;;  %s1413_s25 = sphi %s1495_s25, %s1822_s25   ;;  %s1409_s24 = sphi %s1493_s24, %s1821_s24  }
   0x3   : > { %s173_s29 = ssub.s32 %s1417_s26, %s1508_s28  ;;  %s176_s30 = sadd.s32 1, %s1413_s25 }
   0x4   : > { %p174_p0 = scmp.eq.s32.totalorder %s173_s29, 0  ;;  %p186_p1 = scmp.ne.s32.totalorder %s1413_s25, %s1409_s24 }
   0x5   : > { %p187_p2 = scmp.eq.s32.totalorder %s1506_s27, 3  ;;  %p1076_p3 = scmp.ge.s32.totalorder %s1417_s26, 1 }
   0x6   : > { %s1516_s8 = scalar_select %p174_p0, %s1413_s25, %s176_s30  }
   0x7   : > { %p1518_p4 = por %p187_p2, %p186_p1  ;;  %p246_p5 = scmp.lt.s32.totalorder %s1417_s26, 5 }
   0x9   : > { %p247_p6 = pnand %p1076_p3, %p246_p5 }
   0xa   : > { %v1350_v0 = vld [vmem:[%s1810_s1] sm:$0xff] (!%p247_p6)   ;;  %v1451_v1 = vmov (!%p247_p6), 0.0   ;;  %s1527_s12 = smul.u32 (!%p247_p6), 14, %s1506_s27  ;;  %vm1452_vm0 = vmmov (!%p247_p6), 0   ;;  %vm337_vm1 = vcmask (!%p247_p6), 130048   ;;  %v1352_v14 = vld [vmem:[%s1812_s3 + $0x8] sm:$0xff] (!%p247_p6)  }
   0xb   : > { %250 = sbr.rel (%p247_p6) target bundleno = 791 (0x317), region = 48  ;;  %1154 = vmatprep.subr.bf16.mxu0 (!%p247_p6), %v1451_v1  ;;  %1256 = vmatprep.subr.bf16.mxu1 (!%p247_p6), %v1451_v1  ;;  %v1351_v7 = vld [vmem:[%s1812_s3] sm:$0xff] (!%p247_p6)   ;;  %v1353_v16 = vld [vmem:[%s1812_s3 + $0x10] sm:$0xff] (!%p247_p6)   ;;  %v1354_v26 = vld [vmem:[%s1812_s3 + $0x18] sm:$0xff] (!%p247_p6)   ;;  %vm508_vm2 = vcmask (!%p247_p6), 523264   ;;  %s278_s22 = sand.u32 (!%p247_p6), 1, %s1409_s24  }
   0xc   : > { %1155 = vmatpush3.bf16.msra.mxu0 (!%p247_p6), %v1350_v0  ;;  %1156 = vmatprep.mubr.msk.bf16.mxu0 (!%p247_p6), %vm1452_vm0, %v1451_v1  ;;  %p286_p7 = scmp.lt.s32.totalorder (!%p247_p6), %s1527_s12, 49  ;;  %v1355_v27 = vld [vmem:[%s1814_s5] sm:$0xff] (!%p247_p6)   ;;  %v1356_v28 = vld [vmem:[%s1814_s5 + $0x8] sm:$0xff] (!%p247_p6)   ;;  %v1357_v29 = vld [vmem:[%s1814_s5 + $0x10] sm:$0xff] (!%p247_p6)   ;;  %s1258_s23 = smul.u32 (!%p247_p6), 112, %s278_s22  ;;  %vm789_vm3 = vcmask (!%p247_p6), 261120  }
   0xd   : > { %1257 = vmatpush3.bf16.msra.mxu1 (!%p247_p6), %v1350_v0  ;;  %1172 = vmatprep.mubr.msk.bf16.mxu1 (!%p247_p6), %vm1452_vm0, %v1451_v1  ;;  %v1608_v30 = vld [vmem:[%s1811_s2] ss:$0 sm:$0xff] (!%p247_p6) }
   0xe   : > { %1184 = vmatprep.subr.bf16.mxu1 (!%p247_p6), %v1451_v1  ;;  %1220 = vmatprep.subr.bf16.mxu0 (!%p247_p6), %v1451_v1  ;;  %s1688_s30 = scalar_lea.vmem (!%p247_p6), [#allocation2], %s1258_s23  }
  0x12   : > { %s287_s13 = scalar_select %p286_p7, %s1527_s12, 49 }
  0x13   : > { %s812_s24 = ssub.s32 (%p1518_p4), 50, %s1527_s12  ;;  %s1123_s10 = smul.u32 (%p1518_p4), 112, %s1506_s27 }
  0x14   : > { %s1077_s14 = sshll.u32 %s287_s13, 3  ;;  %p813_p8 = scmp.lt.s32.totalorder (%p1518_p4), %s812_s24, 14 }
  0x15   : > { %s1541_s17 = scalar_lea.vmem %s1809_s0, %s1077_s14  ;;  %s1725_s14 = scalar_lea.vmem (%p1518_p4), %s1816_s7, %s1123_s10  }
  0x16   : > { %v301_v2 = vld [vmem:[%s1541_s17] sm:$0xff]  ;;  %v302_v3 = vld [vmem:[%s1541_s17 + $0x8] sm:$0xff]  ;;  %v303_v8 = vld [vmem:[%s1541_s17 + $0x10] sm:$0xff] }
  0x17   : > { %v315_v4 = vpack.c.bf16 %v302_v3, %v301_v2  ;;  %v309_v5 = vld [vmem:[%s1541_s17 + $0x40] sm:$0xff]  ;;  %v310_v6 = vld [vmem:[%s1541_s17 + $0x48] sm:$0xff]  ;;  %v304_v9 = vld [vmem:[%s1541_s17 + $0x18] sm:$0xff] }
  0x18   : > { %v319_v10 = vpack.c.bf16 %v310_v6, %v309_v5  ;;  %v316_v11 = vpack.c.bf16 %v304_v9, %v303_v8  ;;  %v311_v12 = vld [vmem:[%s1541_s17 + $0x50] sm:$0xff]  ;;  %v312_v13 = vld [vmem:[%s1541_s17 + $0x58] sm:$0xff]  ;;  %v305_v17 = vld [vmem:[%s1541_s17 + $0x20] sm:$0xff] }
  0x19   : > { %1157 = vmatmul.mubr.msk.bf16.vlgmr.msra.gmra.mrb[0].mxu0 %vm337_vm1, %v315_v4  ;;  %v320_v15 = vpack.c.bf16 %v312_v13, %v311_v12  ;;  %v306_v18 = vld [vmem:[%s1541_s17 + $0x28] sm:$0xff]  ;;  %v313_v20 = vld [vmem:[%s1541_s17 + $0x60] sm:$0xff]  ;;  %v307_v23 = vld [vmem:[%s1541_s17 + $0x30] sm:$0xff] }
  0x1a   : > { %1160 = vmatprep.mubr.msk.bf16.mxu0 %vm1452_vm0, %v1451_v1  ;;  %1173 = vmatmul.mubr.msk.bf16.vlgmr.msra.gmra.mrb[0].mxu1 %vm337_vm1, %v319_v10  ;;  %v317_v19 = vpack.c.bf16 %v306_v18, %v305_v17  ;;  %v314_v21 = vld [vmem:[%s1541_s17 + $0x68] sm:$0xff]  ;;  %v308_v24 = vld [vmem:[%s1541_s17 + $0x38] sm:$0xff] }
  0x1b   : > { %1176 = vmatprep.mubr.msk.bf16.mxu1 %vm1452_vm0, %v1451_v1  ;;  %1185 = vmatpush3.bf16.msra.mxu1 %v1351_v7  ;;  %v321_v22 = vpack.c.bf16 %v314_v21, %v313_v20  ;;  %v318_v25 = vpack.c.bf16 %v308_v24, %v307_v23 }
  0x1c   : > { %1186 = vmatprep.subr.bf16.mxu1 %v1451_v1  ;;  %1221 = vmatpush3.bf16.msra.mxu0 %v1355_v27 }
  0x1d   : > { %1222 = vmatprep.subr.bf16.mxu0 %v1451_v1 }
  0x1f   : > { %1187 = vmatpush3.bf16.msra.mxu1 %v1352_v14 }
  0x20   : > { %1188 = vmatprep.subr.bf16.mxu1 %v1451_v1  ;;  %1223 = vmatpush3.bf16.msra.mxu0 %v1356_v28 }
  0x21   : > { %1161 = vmatmul.mubr.msk.bf16.gmra.mrb[4].mxu0 %vm337_vm1, %v316_v11  ;;  %1224 = vmatprep.subr.bf16.mxu0 %v1451_v1 }
  0x22   : > { %1164 = vmatprep.mubr.msk.bf16.mxu0 %vm1452_vm0, %v1451_v1  ;;  %1177 = vmatmul.mubr.msk.bf16.gmra.mrb[4].mxu1 %vm337_vm1, %v320_v15 }
  0x23   : > { %1180 = vmatprep.mubr.msk.bf16.mxu1 %vm1452_vm0, %v1451_v1  ;;  %1189 = vmatpush3.bf16.msra.mxu1 %v1353_v16 }
  0x24   : > { %1190 = vmatprep.subr.bf16.mxu1 %v1451_v1  ;;  %1225 = vmatpush3.bf16.msra.mxu0 %v1357_v29 }
  0x25   : > { %1226 = vmatprep.subr.bf16.mxu0 %v1451_v1 }
  0x27   : > { %1191 = vmatpush3.bf16.msra.mxu1 %v1354_v26 }
  0x29   : > { %1165 = vmatmul.mubr.msk.bf16.gmra.mrb[8].mxu0 %vm337_vm1, %v317_v19 }
  0x2a   : > { %1168 = vmatprep.mubr.msk.bf16.mxu0 %vm1452_vm0, %v1451_v1  ;;  %1181 = vmatmul.mubr.msk.bf16.gmra.mrb[8].mxu1 %vm337_vm1, %v321_v22 }
  0x2b   : > { %1192 = vmatprep.mubr.msk.bf16.mxu1 %vm1452_vm0, %v1451_v1 }
  0x31   : > { %1169 = vmatmul.mubr.msk.bf16.gmra.mrb[12].mxu0 %vm337_vm1, %v318_v25 }
  0x32   : > { %1228 = vmatprep.mubr.msk.bf16.mxu0 %vm1452_vm0, %v1451_v1 }
  0xec   : > { %v393_v31 = vpop.f32.mrb[0].mxu0 }
  0xed   : > { %v394_v32 = vadd.f32 %v1608_v30, %v393_v31  ;;  %v1158_v33 = vpop.f32.mrb[1].mxu0  ;;  %v425_v37 = vpop.f32.mrb[0].mxu1 }
  0xee   : > { %v396_v34 = vpop.f32.mrb[2].mxu0  ;;  %v426_v38 = vadd.f32 %v1608_v30, %v425_v37  ;;  %v1174_v39 = vpop.f32.mrb[1].mxu1 }
  0xef   : > { %v397_v35 = vadd.f32 %v1608_v30, %v396_v34  ;;  %v1159_v36 = vpop.f32.mrb[3].mxu0  ;;  %v448_v40 = vmax.f32 %v394_v32, 0.0  ;;  %v428_v42 = vpop.f32.mrb[2].mxu1  ;;  %v1649_v32 = vld [vmem:[%s1813_s4] ss:$0 sm:$0xff] }
  0xf0   : > { %v456_v43 = vmax.f32 %v426_v38, 0.0  ;;  %v429_v44 = vadd.f32 %v1608_v30, %v428_v42  ;;  %v1175_v45 = vpop.f32.mrb[3].mxu1 }
  0xf1   : > { %v449_v41 = vmax.f32 %v397_v35, 0.0 }
  0xf2   : > { %v457_v48 = vmax.f32 %v429_v44, 0.0 }
  0xf3   : > { %v462_v46 = vpack.c.bf16 %v449_v41, %v448_v40 }
  0xf4   : > { %v401_v47 = vpop.f32.mrb[4].mxu0  ;;  %v466_v52 = vpack.c.bf16 %v457_v48, %v456_v43 }
  0xf5   : > { %v402_v49 = vadd.f32 %v1608_v30, %v401_v47  ;;  %v1162_v50 = vpop.f32.mrb[5].mxu0  ;;  %1193 = vmatmul.mubr.msk.bf16.vlgmr.msra.gmra.mrb[12].mxu1 %vm508_vm2, %v462_v46  ;;  %v433_v55 = vpop.f32.mrb[4].mxu1 }
  0xf6   : > { %v404_v51 = vpop.f32.mrb[6].mxu0  ;;  %1196 = vmatprep.mubr.msk.bf16.mxu1 %vm1452_vm0, %v1451_v1  ;;  %v434_v56 = vadd.f32 %v1608_v30, %v433_v55  ;;  %v1178_v57 = vpop.f32.mrb[5].mxu1 }
  0xf7   : > { %v405_v53 = vadd.f32 %v1608_v30, %v404_v51  ;;  %v1163_v54 = vpop.f32.mrb[7].mxu0  ;;  %v450_v58 = vmax.f32 %v402_v49, 0.0  ;;  %v436_v60 = vpop.f32.mrb[6].mxu1 }
  0xf8   : > { %v458_v61 = vmax.f32 %v434_v56, 0.0  ;;  %v437_v62 = vadd.f32 %v1608_v30, %v436_v60  ;;  %v1179_v63 = vpop.f32.mrb[7].mxu1 }
  0xf9   : > { %v451_v59 = vmax.f32 %v405_v53, 0.0 }
  0xfa   : > { %v459_v3 = vmax.f32 %v437_v62, 0.0 }
  0xfb   : > { %v463_v0 = vpack.c.bf16 %v451_v59, %v450_v58 }
  0xfc   : > { %v409_v2 = vpop.f32.mrb[8].mxu0  ;;  %v467_v7 = vpack.c.bf16 %v459_v3, %v458_v61 }
  0xfd   : > { %v410_v4 = vadd.f32 %v1608_v30, %v409_v2  ;;  %v1166_v5 = vpop.f32.mrb[9].mxu0  ;;  %1197 = vmatmul.mubr.msk.bf16.gmra.mrb[16].mxu1 %vm508_vm2, %v463_v0  ;;  %v441_v10 = vpop.f32.mrb[8].mxu1 }
  0xfe   : > { %v412_v6 = vpop.f32.mrb[10].mxu0  ;;  %1200 = vmatprep.mubr.msk.bf16.mxu1 %vm1452_vm0, %v1451_v1  ;;  %v442_v11 = vadd.f32 %v1608_v30, %v441_v10  ;;  %v1182_v12 = vpop.f32.mrb[9].mxu1 }
  0xff   : > { %v413_v8 = vadd.f32 %v1608_v30, %v412_v6  ;;  %v1167_v9 = vpop.f32.mrb[11].mxu0  ;;  %v452_v13 = vmax.f32 %v410_v4, 0.0  ;;  %v444_v15 = vpop.f32.mrb[10].mxu1 }
 0x100   : > { %v460_v16 = vmax.f32 %v442_v11, 0.0  ;;  %v445_v17 = vadd.f32 %v1608_v30, %v444_v15  ;;  %v1183_v18 = vpop.f32.mrb[11].mxu1 }
 0x101   : > { %v453_v14 = vmax.f32 %v413_v8, 0.0 }
 0x102   : > { %v461_v21 = vmax.f32 %v445_v17, 0.0 }
 0x103   : > { %v464_v19 = vpack.c.bf16 %v453_v14, %v452_v13 }
 0x104   : > { %v417_v20 = vpop.f32.mrb[12].mxu0  ;;  %v468_v25 = vpack.c.bf16 %v461_v21, %v460_v16 }
 0x105   : > { %v418_v22 = vadd.f32 %v1608_v30, %v417_v20  ;;  %v1170_v23 = vpop.f32.mrb[13].mxu0  ;;  %1201 = vmatmul.mubr.msk.bf16.gmra.mrb[20].mxu1 %vm508_vm2, %v464_v19 }
 0x106   : > { %v420_v24 = vpop.f32.mrb[14].mxu0  ;;  %1204 = vmatprep.mubr.msk.bf16.mxu1 %vm1452_vm0, %v1451_v1 }
 0x107   : > { %v421_v26 = vadd.f32 %v1608_v30, %v420_v24  ;;  %v1171_v27 = vpop.f32.mrb[15].mxu0  ;;  %v454_v28 = vmax.f32 %v418_v22, 0.0  ;;  %v1358_v30 = vld [vmem:[%s1814_s5 + $0x18] sm:$0xff]  }
 0x108   : > { %1227 = vmatpush3.bf16.msra.mxu0 %v1358_v30 }
 0x109   : > { %v455_v29 = vmax.f32 %v421_v26, 0.0 }
 0x10b   : > { %v465_v31 = vpack.c.bf16 %v455_v29, %v454_v28 }
 0x10d   : > { %1205 = vmatmul.mubr.msk.bf16.gmra.mrb[24].mxu1 %vm508_vm2, %v465_v31 }
 0x10e   : > { %1208 = vmatprep.mubr.msk.bf16.mxu1 %vm1452_vm0, %v1451_v1 }
 0x115   : > { %1209 = vmatmul.mubr.msk.bf16.gmra.mrb[28].mxu1 %vm508_vm2, %v466_v52 }
 0x116   : > { %1212 = vmatprep.mubr.msk.bf16.mxu1 %vm1452_vm0, %v1451_v1 }
 0x11d   : > { %1213 = vmatmul.mubr.msk.bf16.gmra.mrb[32].mxu1 %vm508_vm2, %v467_v7 }
 0x11e   : > { %1216 = vmatprep.mubr.msk.bf16.mxu1 %vm1452_vm0, %v1451_v1 }
 0x125   : > { %1217 = vmatmul.mubr.msk.bf16.gmra.mrb[36].mxu1 %vm508_vm2, %v468_v25 }
 0x1c8   : > { %v564_v33 = vpop.f32.mrb[12].mxu1 }
 0x1c9   : > { %v565_v34 = vadd.f32 %v1649_v32, %v564_v33  ;;  %v1194_v35 = vpop.f32.mrb[13].mxu1 }
 0x1ca   : > { %v567_v36 = vpop.f32.mrb[14].mxu1 }
 0x1cb   : > { %v568_v37 = vadd.f32 %v1649_v32, %v567_v36  ;;  %v1195_v38 = vpop.f32.mrb[15].mxu1  ;;  %v619_v39 = vmax.f32 %v565_v34, 0.0  ;;  %v1099_v34 = vld [vmem:[%s1815_s6] ss:$0 sm:$0xff] }
 0x1cd   : > { %v620_v40 = vmax.f32 %v568_v37, 0.0 }
 0x1cf   : > { %v633_v41 = vpack.c.bf16 %v620_v40, %v619_v39 }
 0x1d0   : > { %v572_v42 = vpop.f32.mrb[16].mxu1 }
 0x1d1   : > { %v573_v43 = vadd.f32 %v1649_v32, %v572_v42  ;;  %v1198_v44 = vpop.f32.mrb[17].mxu1  ;;  %1229 = vmatmul.mubr.msk.bf16.vlgmr.msra.gmra.mrb[16].mxu0 %vm508_vm2, %v633_v41 }
 0x1d2   : > { %v575_v45 = vpop.f32.mrb[18].mxu1  ;;  %1232 = vmatprep.mubr.msk.bf16.mxu0 %vm1452_vm0, %v1451_v1 }
 0x1d3   : > { %v576_v46 = vadd.f32 %v1649_v32, %v575_v45  ;;  %v1199_v47 = vpop.f32.mrb[19].mxu1  ;;  %v621_v48 = vmax.f32 %v573_v43, 0.0 }
 0x1d5   : > { %v622_v49 = vmax.f32 %v576_v46, 0.0 }
 0x1d7   : > { %v634_v50 = vpack.c.bf16 %v622_v49, %v621_v48 }
 0x1d8   : > { %v580_v51 = vpop.f32.mrb[20].mxu1 }
 0x1d9   : > { %v581_v52 = vadd.f32 %v1649_v32, %v580_v51  ;;  %v1202_v53 = vpop.f32.mrb[21].mxu1  ;;  %1233 = vmatmul.mubr.msk.bf16.gmra.mrb[20].mxu0 %vm508_vm2, %v634_v50 }
 0x1da   : > { %v583_v54 = vpop.f32.mrb[22].mxu1  ;;  %1236 = vmatprep.mubr.msk.bf16.mxu0 %vm1452_vm0, %v1451_v1 }
 0x1db   : > { %v584_v55 = vadd.f32 %v1649_v32, %v583_v54  ;;  %v1203_v56 = vpop.f32.mrb[23].mxu1  ;;  %v623_v57 = vmax.f32 %v581_v52, 0.0 }
 0x1dd   : > { %v624_v58 = vmax.f32 %v584_v55, 0.0 }
 0x1df   : > { %v635_v59 = vpack.c.bf16 %v624_v58, %v623_v57 }
 0x1e0   : > { %v588_v60 = vpop.f32.mrb[24].mxu1 }
 0x1e1   : > { %v589_v61 = vadd.f32 %v1649_v32, %v588_v60  ;;  %v1206_v62 = vpop.f32.mrb[25].mxu1  ;;  %1237 = vmatmul.mubr.msk.bf16.gmra.mrb[24].mxu0 %vm508_vm2, %v635_v59 }
 0x1e2   : > { %v591_v63 = vpop.f32.mrb[26].mxu1  ;;  %1240 = vmatprep.mubr.msk.bf16.mxu0 %vm1452_vm0, %v1451_v1 }
 0x1e3   : > { %v592_v0 = vadd.f32 %v1649_v32, %v591_v63  ;;  %v1207_v2 = vpop.f32.mrb[27].mxu1  ;;  %v625_v3 = vmax.f32 %v589_v61, 0.0 }
 0x1e5   : > { %v626_v4 = vmax.f32 %v592_v0, 0.0 }
 0x1e7   : > { %v636_v5 = vpack.c.bf16 %v626_v4, %v625_v3 }
 0x1e8   : > { %v596_v6 = vpop.f32.mrb[28].mxu1 }
 0x1e9   : > { %v597_v7 = vadd.f32 %v1649_v32, %v596_v6  ;;  %v1210_v8 = vpop.f32.mrb[29].mxu1  ;;  %1241 = vmatmul.mubr.msk.bf16.gmra.mrb[28].mxu0 %vm508_vm2, %v636_v5 }
 0x1ea   : > { %v599_v9 = vpop.f32.mrb[30].mxu1  ;;  %1244 = vmatprep.mubr.msk.bf16.mxu0 %vm1452_vm0, %v1451_v1 }
 0x1eb   : > { %v600_v10 = vadd.f32 %v1649_v32, %v599_v9  ;;  %v1211_v11 = vpop.f32.mrb[31].mxu1  ;;  %v627_v12 = vmax.f32 %v597_v7, 0.0 }
 0x1ed   : > { %v628_v13 = vmax.f32 %v600_v10, 0.0 }
 0x1ef   : > { %v637_v14 = vpack.c.bf16 %v628_v13, %v627_v12 }
 0x1f0   : > { %v604_v15 = vpop.f32.mrb[32].mxu1 }
 0x1f1   : > { %v605_v16 = vadd.f32 %v1649_v32, %v604_v15  ;;  %v1214_v17 = vpop.f32.mrb[33].mxu1  ;;  %1245 = vmatmul.mubr.msk.bf16.gmra.mrb[32].mxu0 %vm508_vm2, %v637_v14 }
 0x1f2   : > { %v607_v18 = vpop.f32.mrb[34].mxu1  ;;  %1248 = vmatprep.mubr.msk.bf16.mxu0 %vm1452_vm0, %v1451_v1 }
 0x1f3   : > { %v608_v19 = vadd.f32 %v1649_v32, %v607_v18  ;;  %v1215_v20 = vpop.f32.mrb[35].mxu1  ;;  %v629_v21 = vmax.f32 %v605_v16, 0.0 }
 0x1f5   : > { %v630_v22 = vmax.f32 %v608_v19, 0.0 }
 0x1f7   : > { %v638_v23 = vpack.c.bf16 %v630_v22, %v629_v21 }
 0x1f8   : > { %v612_v24 = vpop.f32.mrb[36].mxu1 }
 0x1f9   : > { %v613_v25 = vadd.f32 %v1649_v32, %v612_v24  ;;  %v1218_v26 = vpop.f32.mrb[37].mxu1  ;;  %1249 = vmatmul.mubr.msk.bf16.gmra.mrb[36].mxu0 %vm508_vm2, %v638_v23 }
 0x1fa   : > { %v615_v27 = vpop.f32.mrb[38].mxu1  ;;  %1252 = vmatprep.mubr.msk.bf16.mxu0 %vm1452_vm0, %v1451_v1 }
 0x1fb   : > { %v616_v28 = vadd.f32 %v1649_v32, %v615_v27  ;;  %v1219_v29 = vpop.f32.mrb[39].mxu1  ;;  %v631_v31 = vmax.f32 %v613_v25, 0.0 }
 0x1fd   : > { %v632_v30 = vmax.f32 %v616_v28, 0.0 }
 0x1ff   : > { %v639_v33 = vpack.c.bf16 %v632_v30, %v631_v31 }
 0x201   : > { %1253 = vmatmul.mubr.msk.bf16.gmra.mrb[40].mxu0 %vm508_vm2, %v639_v33 }
 0x2a4   : > { %v734_v35 = vpop.f32.mrb[16].mxu0 }
 0x2a5   : > { %v735_v36 = vadd.f32 %v1099_v34, %v734_v35  ;;  %v1230_v37 = vpop.f32.mrb[17].mxu0 }
 0x2a6   : > { %v737_v38 = vpop.f32.mrb[18].mxu0 }
 0x2a7   : > { %790 = vst.msk [vmem:[%s1688_s30] sm:$0xff] %vm789_vm3, %v735_v36  ;;  %v738_v1 = vadd.f32 %v1099_v34, %v737_v38  ;;  %v1231_v32 = vpop.f32.mrb[19].mxu0 }
 0x2a9   : > { %791 = vst.msk [vmem:[%s1688_s30 + $0x8] sm:$0xff] %vm789_vm3, %v738_v1 }
 0x2ac   : > { %v742_v39 = vpop.f32.mrb[20].mxu0 }
 0x2ad   : > { %v743_v40 = vadd.f32 %v1099_v34, %v742_v39  ;;  %v1234_v41 = vpop.f32.mrb[21].mxu0 }
 0x2ae   : > { %v745_v42 = vpop.f32.mrb[22].mxu0 }
 0x2af   : > { %792 = vst.msk [vmem:[%s1688_s30 + $0x10] sm:$0xff] %vm789_vm3, %v743_v40  ;;  %v746_v43 = vadd.f32 %v1099_v34, %v745_v42  ;;  %v1235_v44 = vpop.f32.mrb[23].mxu0 }
 0x2b1   : > { %793 = vst.msk [vmem:[%s1688_s30 + $0x18] sm:$0xff] %vm789_vm3, %v746_v43 }
 0x2b4   : > { %v750_v45 = vpop.f32.mrb[24].mxu0 }
 0x2b5   : > { %v751_v46 = vadd.f32 %v1099_v34, %v750_v45  ;;  %v1238_v47 = vpop.f32.mrb[25].mxu0 }
 0x2b6   : > { %v753_v48 = vpop.f32.mrb[26].mxu0 }
 0x2b7   : > { %794 = vst.msk [vmem:[%s1688_s30 + $0x20] sm:$0xff] %vm789_vm3, %v751_v46  ;;  %v754_v49 = vadd.f32 %v1099_v34, %v753_v48  ;;  %v1239_v50 = vpop.f32.mrb[27].mxu0 }
 0x2b9   : > { %795 = vst.msk [vmem:[%s1688_s30 + $0x28] sm:$0xff] %vm789_vm3, %v754_v49 }
 0x2bc   : > { %v758_v51 = vpop.f32.mrb[28].mxu0 }
 0x2bd   : > { %v759_v52 = vadd.f32 %v1099_v34, %v758_v51  ;;  %v1242_v53 = vpop.f32.mrb[29].mxu0 }
 0x2be   : > { %v761_v54 = vpop.f32.mrb[30].mxu0 }
 0x2bf   : > { %796 = vst.msk [vmem:[%s1688_s30 + $0x30] sm:$0xff] %vm789_vm3, %v759_v52  ;;  %v762_v55 = vadd.f32 %v1099_v34, %v761_v54  ;;  %v1243_v56 = vpop.f32.mrb[31].mxu0 }
 0x2c1   : > { %797 = vst.msk [vmem:[%s1688_s30 + $0x38] sm:$0xff] %vm789_vm3, %v762_v55 }
 0x2c4   : > { %v766_v57 = vpop.f32.mrb[32].mxu0 }
 0x2c5   : > { %v767_v58 = vadd.f32 %v1099_v34, %v766_v57  ;;  %v1246_v59 = vpop.f32.mrb[33].mxu0 }
 0x2c6   : > { %v769_v60 = vpop.f32.mrb[34].mxu0 }
 0x2c7   : > { %798 = vst.msk [vmem:[%s1688_s30 + $0x40] sm:$0xff] %vm789_vm3, %v767_v58  ;;  %v770_v61 = vadd.f32 %v1099_v34, %v769_v60  ;;  %v1247_v62 = vpop.f32.mrb[35].mxu0 }
 0x2c9   : > { %799 = vst.msk [vmem:[%s1688_s30 + $0x48] sm:$0xff] %vm789_vm3, %v770_v61 }
 0x2cc   : > { %v774_v63 = vpop.f32.mrb[36].mxu0 }
 0x2cd   : > { %v775_v0 = vadd.f32 %v1099_v34, %v774_v63  ;;  %v1250_v2 = vpop.f32.mrb[37].mxu0 }
 0x2ce   : > { %v777_v3 = vpop.f32.mrb[38].mxu0 }
 0x2cf   : > { %800 = vst.msk [vmem:[%s1688_s30 + $0x50] sm:$0xff] %vm789_vm3, %v775_v0  ;;  %v778_v4 = vadd.f32 %v1099_v34, %v777_v3  ;;  %v1251_v5 = vpop.f32.mrb[39].mxu0 }
 0x2d1   : > { %801 = vst.msk [vmem:[%s1688_s30 + $0x58] sm:$0xff] %vm789_vm3, %v778_v4 }
 0x2d3   : > { %810 = sbr.rel (!%p1518_p4) target bundleno = 791 (0x317), region = 52 }
 0x2d4   : > { %v782_v6 = vpop.f32.mrb[40].mxu0 }
 0x2d5   : > { %v783_v7 = vadd.f32 %v1099_v34, %v782_v6  ;;  %v1254_v8 = vpop.f32.mrb[41].mxu0 }
 0x2d6   : > { %v785_v9 = vpop.f32.mrb[42].mxu0 }
 0x2d7   : > { %802 = vst.msk [vmem:[%s1688_s30 + $0x60] sm:$0xff] %vm789_vm3, %v783_v7  ;;  %v786_v10 = vadd.f32 %v1099_v34, %v785_v9  ;;  %v1255_v11 = vpop.f32.mrb[43].mxu0 }
 0x2d9   : > { %803 = vst.msk [vmem:[%s1688_s30 + $0x68] sm:$0xff] %vm789_vm3, %v786_v10 }
 0x2da   : > { %s1825_s24 = smov (!%p813_p8, %s812_s24), 14 }
 0x2db   : > { %s1111_s15 = sshll.u32 %s1825_s24, 7 }
 0x2dc   : > { %p1114_p9 = scmp.eq.s32.totalorder %s1111_s15, 0 }
 0x2dd   : > { %1359 = sdivrem.u32 (!%p1114_p9), %s1825_s24, 14 }
 0x2de   : > { %821 = sbr.rel (%p1114_p9) target bundleno = 791 (0x317), region = 56 }
 0x2e6   : > { %s1731_s9 = spop.drf %1359 }
 0x2e7   : > { %p1115_p10 = scmp.le.s32.totalorder %s1731_s9, 0 }
 0x2e8   : > { %s1818_s27 = smov (!%p1115_p10), %s1725_s14  ;;  %s1819_s12 = smov (!%p1115_p10), %s1688_s30 }
 0x2e9   : > { %1029 = sbr.rel (%p1115_p10) target bundleno = 762 (0x2fa), region = 132  ;;  %s1740_s16 = smov (!%p1115_p10), 0  }
 0x2ea   : > { %s1742_s17 = smov (!%p1115_p10), 0  }
 0x2f0 LB: >> { %v911_v12 = vld [vmem:[%s1425_s12] sm:$0xff]  ;;  %v913_v13 = vld [vmem:[%s1425_s12 + $0x8] sm:$0xff]  ;;  %v915_v14 = vld [vmem:[%s1425_s12 + $0x10] sm:$0xff]  ;;  %s939_s18 = sadd.s32 1, %s1429_s16  ;;  %s905_s17 = sadd.s32 1, %s1433_s17   ;;  %s1433_s17 = sphi %s1742_s17, %s905_s17   ;;  %s1429_s16 = sphi %s1740_s16, %s1820_s16   ;;  %s1425_s12 = sphi %s1819_s12, %s944_s12   ;;  %s1421_s27 = sphi %s1818_s27, %s945_s27  }
 0x2f1   : >> { %912 = vst [vmem:[%s1421_s27] sm:$0xff] %v911_v12  ;;  %914 = vst [vmem:[%s1421_s27 + $0x8] sm:$0xff] %v913_v13  ;;  %v917_v15 = vld [vmem:[%s1425_s12 + $0x18] sm:$0xff]  ;;  %v919_v16 = vld [vmem:[%s1425_s12 + $0x20] sm:$0xff]  ;;  %p940_p11 = scmp.ge.s32.totalorder %s939_s18, %s1731_s9  ;;  %p904_p12 = scmp.ge.s32.totalorder %s905_s17, %s1731_s9 }
 0x2f2   : >> { %916 = vst [vmem:[%s1421_s27 + $0x10] sm:$0xff] %v915_v14  ;;  %v921_v17 = vld [vmem:[%s1425_s12 + $0x28] sm:$0xff]  ;;  %918 = vst [vmem:[%s1421_s27 + $0x18] sm:$0xff] %v917_v15  ;;  %v923_v18 = vld [vmem:[%s1425_s12 + $0x30] sm:$0xff] }
 0x2f3   : >> { %920 = vst [vmem:[%s1421_s27 + $0x20] sm:$0xff] %v919_v16  ;;  %922 = vst [vmem:[%s1421_s27 + $0x28] sm:$0xff] %v921_v17  ;;  %v925_v19 = vld [vmem:[%s1425_s12 + $0x38] sm:$0xff]  ;;  %v927_v20 = vld [vmem:[%s1425_s12 + $0x40] sm:$0xff]  ;;  %s1827_s18 = smov (%p940_p11, %s939_s18), 0  ;;  %907 = sbr.rel (!%p904_p12) target bundleno = 752 (0x2f0), region = 138 }
 0x2f4   : >> { %924 = vst [vmem:[%s1421_s27 + $0x30] sm:$0xff] %v923_v18  ;;  %926 = vst [vmem:[%s1421_s27 + $0x38] sm:$0xff] %v925_v19  ;;  %v929_v21 = vld [vmem:[%s1425_s12 + $0x48] sm:$0xff]  ;;  %v931_v22 = vld [vmem:[%s1425_s12 + $0x50] sm:$0xff]  ;;  %s942_s19 = smul.u32 112, %s1827_s18  ;;  %s1820_s16 = smov %s1827_s18 }
 0x2f5   : >> { %928 = vst [vmem:[%s1421_s27 + $0x40] sm:$0xff] %v927_v20  ;;  %v933_v23 = vld [vmem:[%s1425_s12 + $0x58] sm:$0xff]  ;;  %930 = vst [vmem:[%s1421_s27 + $0x48] sm:$0xff] %v929_v21  ;;  %v935_v24 = vld [vmem:[%s1425_s12 + $0x60] sm:$0xff] }
 0x2f6   : >> { %932 = vst [vmem:[%s1421_s27 + $0x50] sm:$0xff] %v931_v22  ;;  %934 = vst [vmem:[%s1421_s27 + $0x58] sm:$0xff] %v933_v23  ;;  %v937_v25 = vld [vmem:[%s1425_s12 + $0x68] sm:$0xff]  ;;  %s944_s12 = scalar_lea.vmem %s1688_s30, %s942_s19 [#allocation2]  }
 0x2f7   : >> { %936 = vst [vmem:[%s1421_s27 + $0x60] sm:$0xff] %v935_v24  ;;  %938 = vst [vmem:[%s1421_s27 + $0x68] sm:$0xff] %v937_v25  ;;  %s945_s27 = scalar_lea.vmem %s1725_s14, %s942_s19  }
 0x2fa PF: > { %1361 = sdivrem.u32 %s1825_s24, 14 }
 0x2fb   : > { %s1116_s20 = smul.u32 112, %s1731_s9 }
 0x2fd   : > { %s950_s21 = scalar_lea.vmem %s1688_s30, %s1116_s20 [#allocation2]   ;;  %s952_s22 = scalar_lea.vmem %s1725_s14, %s1116_s20  }
 0x303   : > { %s1362_s23 = spop.drf %1361 }
 0x304   : > { %p1118_p13 = scmp.le.s32.totalorder %s1362_s23, 0 }
 0x305   : > { %s1435_s26 = smov (!%p1118_p13), %s952_s22   ;;  %s1439_s29 = smov (!%p1118_p13), %s950_s21  }
 0x306   : > { %1043 = sbr.rel (%p1118_p13) target bundleno = 791 (0x317), region = 143  ;;  %s1443_s10 = smov (!%p1118_p13), 0  }
 0x307   : > { %s1447_s11 = smov (!%p1118_p13), 0  }
 0x30d LB: >> { %v962_v26 = vld [vmem:[%s1441_s29] sm:$0xff]  ;;  %s964_s13 = sadd.s32 1, %s1445_s10  ;;  %s956_s11 = sadd.s32 1, %s1449_s11   ;;  %s1449_s11 = sphi %s1447_s11, %s956_s11   ;;  %s1445_s10 = sphi %s1443_s10, %s1444_s10   ;;  %s1441_s29 = sphi %s1439_s29, %s969_s29   ;;  %s1437_s26 = sphi %s1435_s26, %s970_s26  }
 0x30e   : >> { %963 = vst [vmem:[%s1437_s26] sm:$0xff] %v962_v26  ;;  %p965_p0 = scmp.ge.s32.totalorder %s964_s13, %s1362_s23  ;;  %p955_p1 = scmp.ge.s32.totalorder %s956_s11, %s1362_s23 }
 0x310   : >> { %s1829_s13 = smov (%p965_p0, %s964_s13), 0  ;;  %958 = sbr.rel (!%p955_p1) target bundleno = 781 (0x30d), region = 149 }
 0x311   : >> { %s1119_s30 = sshll.u32 %s1829_s13, 3  ;;  %s1444_s10 = smov %s1829_s13  }
 0x312   : >> { %s969_s29 = scalar_lea.vmem %s950_s21, %s1119_s30 [#allocation2]   ;;  %s970_s26 = scalar_lea.vmem %s952_s22, %s1119_s30  }
 0x317 PF: > { %p14_p2 = scmp.ge.s32.totalorder %s1508_s28, 6   ;;  %s1821_s24 = smov %s1413_s25 }
 0x318   : > { %s1822_s25 = smov %s1516_s8  ;;  %s1823_s26 = smov %s1508_s28 }
 0x319   :  { %16 = sbr.rel (!%p14_p2) target bundleno = 2 (0x2), region = 160 }

</bundles_post_ra>
